<compile_context>
chip_gen: v7x
topology: tpu7x:2x2x1
jax: 0.10.0
libtpu: 0.0.40
codegen_flags: <defaults>
</compile_context>

<pallas_src>
import jax
import jax.numpy as jnp
from jax.experimental import pallas as pl
from jax.experimental.pallas import tpu as pltpu


_VMEM_LIMIT_BYTES = 48 * 1024 * 1024       # scoped VMEM; fits v7x 64 MiB/TC w/ headroom
_PIPELINE_BUDGET_BYTES = 40 * 1024 * 1024  # double-buffered (input + output) blocks


def _to_float_kernel(x_ref, o_ref):
    # Multiply by the constant-folded reciprocal: one vmul per vreg on top of the
    # u8->f32 convert, fully hidden under the HBM DMA on all of v5e/v6e/v7x.
    # May differ from an exact f32 divide by <= 1 ulp (values are <= 1.0).
    o_ref[...] = x_ref[...].astype(jnp.float32) * jnp.float32(1.0 / 255.0)


def _to_float_kernel_exact(x_ref, o_ref):
    # Exact IEEE divide: bit-parity with torch's .float().div(255), at the cost of
    # an EUP vrcp + Newton-Raphson VALU sequence per vreg (can bind VALU on v7x).
    o_ref[...] = x_ref[...].astype(jnp.float32) / jnp.float32(255.0)


def _pick_lane_width(total: int, max_lanes: int, gran: int) -> int:
    """Widest multiple of 128 (<= max_lanes) dividing `total`.

    Prefers a width leaving >= `gran` rows (input packed sublane count: 32 for
    8-bit, 16 for 16-bit, 8 for 32-bit), then >= 8 rows (f32 output sublanes),
    then the widest divisor of all. Returns 0 if no multiple of 128 divides it.
    """
    best_any = 0
    best_8 = 0
    c = (max_lanes // 128) * 128
    while c >= 128:
        if total % c == 0:
            if best_any == 0:
                best_any = c
            if best_8 == 0 and total // c >= 8:
                best_8 = c
            if total // c >= gran:
                return c
        c -= 128
    return best_8 if best_8 else best_any


def to_float(x: jax.Array, *, max_lanes: int = 8192, exact_div: bool = False) -> jax.Array:
    """Equivalent of ToFloat().forward: x.float().div(255). Returns float32, same shape."""
    orig_shape = x.shape
    n = int(x.size)
    if n == 0:
        return jnp.zeros(orig_shape, jnp.float32)

    itemsize = jnp.dtype(x.dtype).itemsize
    # Packed sublane granularity of the *input* dtype: (32,128) for 8-bit,
    # (16,128) for 16-bit, (8,128) for 32-bit.
    gran = {1: 32, 2: 16}.get(itemsize, 8)

    lanes = _pick_lane_width(n, max_lanes, gran)
    pad = 0
    if lanes == 0:
        # Ragged element count (n % 128 != 0): padded fallback.
        # NOTE: the pad amount is tiny (< 128 elems) but jnp.pad copies the whole
        # input and the trailing output slice copies the whole fp32 output, i.e.
        # O(n) extra HBM traffic. Real NCHW image shapes never hit this branch.
        # TODO(synk): replace with in-kernel tail masking (flat pl.ANY input ref +
        # bounded last-chunk DMA) so ragged shapes also stay at the 5 B/elem roofline.
        padded = pl.cdiv(n, 128) * 128
        pad = padded - n
        x = jnp.pad(jnp.reshape(x, (-1,)), (0, pad))
        lanes = _pick_lane_width(padded, max_lanes, gran)
    total = n + pad
    rows = total // lanes
    x2d = jnp.reshape(x, (rows, lanes))

    # Block rows: biggest block whose double-buffered in+out fits the VMEM pipeline
    # budget (amortizes ~0.35 us/step grid overhead to a few %), rounded to the
    # input's packed sublane granularity.  Never emit a 1-step grid when rows allow
    # >= 2 blocks: grid=(1,) would idle one v7x TensorCore and serialize DMA/compute.
    bytes_per_elem = itemsize + 4                                   # in + f32 out
    budget_rows = max(gran, (_PIPELINE_BUDGET_BYTES // 2 // bytes_per_elem) // lanes)
    if rows <= budget_rows:
        if rows >= 2 * gran:
            half = -(-rows // 2)                                    # ceil(rows / 2)
            br = -(-half // gran) * gran                            # round up to gran
        else:
            br = rows                                               # tiny input
    else:
        br = max(gran, (budget_rows // gran) * gran)

    grid = (pl.cdiv(rows, br),)   # ragged last block is masked by Pallas

    kernel = _to_float_kernel_exact if exact_div else _to_float_kernel
    out2d = pl.pallas_call(
        kernel,
        out_shape=jax.ShapeDtypeStruct((rows, lanes), jnp.float32),
        grid_spec=pltpu.PrefetchScalarGridSpec(
            num_scalar_prefetch=0,
            grid=grid,
            in_specs=[pl.BlockSpec((br, lanes), lambda i: (i, 0))],
            out_specs=pl.BlockSpec((br, lanes), lambda i: (i, 0)),
        ),
        compiler_params=pltpu.CompilerParams(
            dimension_semantics=("parallel",),       # shards across v7x's 2 TCs
            vmem_limit_bytes=_VMEM_LIMIT_BYTES,
        ),
        # pipeline_mode=pl.Buffered(3) is a possible measured sweep on v7x if xprof
        # shows exposed DMA at step boundaries; not a default (VMEM is scarce there).
    )(x2d)

    if pad:
        return out2d.reshape(-1)[:n].reshape(orig_shape)
    return out2d.reshape(orig_shape)


if __name__ == "__main__":
    key = jax.random.PRNGKey(0)

    # Small NCHW uint8 image batch, consistent with the module's intended use.
    x_u8 = jax.random.randint(key, (2, 4, 16, 16), 0, 256, dtype=jnp.int32).astype(jnp.uint8)
    ref = x_u8.astype(jnp.float32) / 255.0

    out = jax.block_until_ready(to_float(x_u8))
    assert out.shape == x_u8.shape
    assert out.dtype == jnp.float32
    assert jnp.allclose(out, ref, atol=1e-6), "mismatch vs reference (uint8 path)"

    # Exact-divide variant (bit-parity with torch .float().div(255)).
    out_exact = jax.block_until_ready(to_float(x_u8, exact_div=True))
    assert jnp.allclose(out_exact, ref, atol=1e-7), "mismatch vs reference (exact-div path)"

    # Ragged element count exercises the padded fallback path.
    x_ragged = jax.random.randint(jax.random.PRNGKey(1), (3, 5, 7), 0, 256,
                                  dtype=jnp.int32).astype(jnp.uint8)
    out_r = jax.block_until_ready(to_float(x_ragged))
    ref_r = x_ragged.astype(jnp.float32) / 255.0
    assert out_r.shape == x_ragged.shape
    assert jnp.allclose(out_r, ref_r, atol=1e-6), "mismatch vs reference (ragged path)"

    print("KERNEL_OK")
</pallas_src>

<mosaic_0001>
module attributes {stable_mosaic.version = 11 : i64} {
  func.func @_to_float_kernel(%arg0: i32, %arg1: memref<8x256xi8, #tpu.memory_space<vmem>>, %arg2: memref<8x256xf32, #tpu.memory_space<vmem>>) attributes {dimension_semantics = [#tpu.dimension_semantics<parallel>], iteration_bounds = array<i64: 1>, scalar_prefetch = 0 : i64, scratch_operands = 0 : i64, tpu.core_type = #tpu.core_type<tc>, window_params = [{transform_indices = @transform_0, window_bounds = array<i64: 8, 256>}, {transform_indices = @transform_1, window_bounds = array<i64: 8, 256>}]} {
    %c0 = arith.constant 0 : index
    %c0_0 = arith.constant 0 : index
    %0 = vector.load %arg1[%c0, %c0_0] : memref<8x256xi8, #tpu.memory_space<vmem>>, vector<8x256xi8>
    %1 = arith.uitofp %0 : vector<8x256xi8> to vector<8x256xf32>
    %cst = arith.constant 0.00392156886 : f32
    %2 = vector.broadcast %cst : f32 to vector<8x256xf32>
    %3 = arith.mulf %1, %2 : vector<8x256xf32>
    %c0_1 = arith.constant 0 : index
    %c0_2 = arith.constant 0 : index
    %4 = vector.load %arg2[%c0_1, %c0_2] : memref<8x256xf32, #tpu.memory_space<vmem>>, vector<8x256xf32>
    tpu.vector_store %arg2[%c0_1, %c0_2], %3 {strides = array<i32>} : memref<8x256xf32, #tpu.memory_space<vmem>>, vector<8x256xf32>,
    return
  }
  func.func @transform_0(%arg0: i32) -> (i32, i32) {
    %c0_i32 = arith.constant 0 : i32
    %c0_i32_0 = arith.constant 0 : i32
    return %arg0, %c0_i32 : i32, i32
  }
  func.func @transform_1(%arg0: i32) -> (i32, i32) {
    %c0_i32 = arith.constant 0 : i32
    %c0_i32_0 = arith.constant 0 : i32
    return %arg0, %c0_i32 : i32, i32
  }
}

</mosaic_0001>

<bundles_post_ra>
// kernel: tpu_custom_call.1
= control target key start
LH: loop header
LB: loop body
LE: loop exit
PB: predicated region body
PF: predicated region fallthrough
CT: control target
= control target key end

     0   :  { %6 = vsyncpa [#allocation3], 0  ;;  %s133_s0 = inlined_call_operand.hbm [shape: u8[8,256], index: 0, kind: input, shape index: {}]   ;;  %s134_s1 = inlined_call_operand.hbm [shape: f32[8,256], index: 1, kind: output, shape index: {}]  }
   0x1   :  { %7 = vsyncpa [#allocation4], 0  ;;  %s97_s6 = smov [#allocation2]   ;;  %s49_s10 = scalar_lea.hbm %s133_s0, 64 }
   0x2   :  { %s14_s7 = sshll.u32 %s97_s6, 4  ;;  %p50_p0 = scmp.ne.s32.totalorder %s133_s0, %s49_s10  ;;  %s15_s7 = int_to_ptr.vmem [resolvable:$true] %s14_s7 }
   0x3   :  { %p53_p1 = scmp.lt.u32.totalorder %s49_s10, %s133_s0 }
   0x5   :  { %p55_p2 = pnand %p53_p1, %p50_p0 }
   0x7   :  { %58 = shalt.err (!%p55_p2)
}
   0x8   :  { %s59_s15 = scalar_lea.vmem %s15_s7, 64  ;;  %p64_p4 = scmp.lt.s32.totalorder %s15_s7, %s15_s7 }
   0x9   :  { %p60_p3 = scmp.ne.s32.totalorder %s15_s7, %s59_s15  ;;  %p65_p5 = scmp.lt.s32.totalorder %s59_s15, %s59_s15 }
   0xb   :  { %p66_p6 = por %p65_p5, %p64_p4 }
   0xd   :  { %p67_p7 = pnand %p66_p6, %p60_p3 }
   0xf   :  { %70 = shalt.err (!%p67_p7)
}
  0x10   :  { %17 = dma.hbm_to_vmem [thread:$0]  %s133_s0, 64, %s15_s7, [#allocation3]  }
  0x11   :  { %93 = dma.done.wait [#allocation3], 64  }
  0x12   :  { %94 = vsyncadd [#allocation3], 4294967232  ;;  %v21_v0 = vld [vmem:[#allocation2] sm:$0xf]  ;;  %s98_s18 = smov [#allocation5]  }
  0x13   :  { %v22_v1 = vunpack.c.0.s8 %v21_v0  ;;  %v23_v2 = vunpack.c.1.s8 %v21_v0  ;;  %s38_s19 = sshll.u32 %s98_s18, 4  ;;  %s39_s19 = int_to_ptr.vmem [resolvable:$true] %s38_s19 }
  0x14   :  { %s71_s20 = scalar_lea.vmem %s39_s19, 256  ;;  %p76_p9 = scmp.lt.s32.totalorder %s39_s19, %s39_s19 }
  0x15   :  { %v24_v3 = vand.u32 255, %v22_v1  ;;  %v25_v4 = vand.u32 255, %v23_v2  ;;  %p72_p8 = scmp.ne.s32.totalorder %s39_s19, %s71_s20  ;;  %p77_p10 = scmp.lt.s32.totalorder %s71_s20, %s71_s20 }
  0x17   :  { %v26_v5 = vcvt.s32.f32 %v24_v3  ;;  %v27_v6 = vcvt.s32.f32 %v25_v4  ;;  %p78_p11 = por %p77_p10, %p76_p9 }
  0x19   :  { %v28_v7 = vmul.f32 0.003921569, %v26_v5  ;;  %v29_v8 = vmul.f32 0.003921569, %v27_v6  ;;  %p79_p12 = pnand %p78_p11, %p72_p8 }
  0x1b   :  { %30 = vst [vmem:[#allocation5] sm:$0xff] %v28_v7  ;;  %31 = vst [vmem:[#allocation5 + $0x8] sm:$0xff] %v29_v8 }
  0x1c   :  { %82 = shalt.err (!%p79_p12)
}
  0x1d   :  { %s83_s22 = scalar_lea.hbm %s134_s1, 256 }
  0x1e   :  { %p84_p13 = scmp.ne.s32.totalorder %s134_s1, %s83_s22  ;;  %p87_p0 = scmp.lt.u32.totalorder %s83_s22, %s134_s1 }
  0x20   :  { %p89_p1 = pnand %p87_p0, %p84_p13 }
  0x22   :  { %92 = shalt.err (!%p89_p1)
}
  0x23   :  { %41 = dma.vmem_to_hbm [thread:$0]  %s39_s19, 256, %s134_s1, [#allocation4]  }
  0x24   :  { %95 = dma.done.wait [#allocation4], 256  }
  0x25   :  { %96 = vsyncadd [#allocation4], 4294967040 }
  0x26   :  { %45 = vsyncpa [#allocation3], 1 }
  0x27   :  { %46 = vsyncpa [#allocation4], 1 }

</bundles_post_ra>
